<compile_context>
chip_gen: v5e
topology: v5e:2x2
jax: 0.10.0
libtpu: 0.0.40
codegen_flags: <defaults>
</compile_context>

<pallas_src>
import functools

import jax
import jax.numpy as jnp
from jax import lax
from jax.experimental import pallas as pl
from jax.experimental.pallas import tpu as pltpu

_LANE = 128


# ------------------------------ helpers -------------------------------------
def _round_up(x, mult):
    return -(-x // mult) * mult


def _vmem_capacity_bytes():
    """Trace-time hardware query; fall back to the smallest per-core VMEM
    across supported generations (v7x: 64 MiB/TC) if unavailable."""
    try:
        return int(pltpu.get_tpu_info().vmem_capacity_bytes)
    except Exception:
        return 64 * 1024 * 1024


def _plan(m, kdim, itemsize, fixed_bytes, k_tile=None):
    """Pick (tk, needs_mask, vmem_limit_bytes).

    tk is the largest lane-aligned K tile whose double-buffered stream fits
    the generation's usable VMEM after subtracting the resident (m, m)
    buffers (`fixed_bytes`).  Prefers a tile that divides kdim exactly so no
    in-kernel masking is needed; otherwise budgets for the mask intermediates.
    """
    cap = _vmem_capacity_bytes()
    # Never request the whole physical VMEM (v7x = 64 MiB/TC): keep >=12 MiB
    # for compiler-internal scratch / pipeline bookkeeping; cap the request at
    # ~100 MiB on the 128 MiB parts (v5e/v6e).
    usable = min(cap - max(12 * 1024 * 1024, cap // 8), 100 * 1024 * 1024)
    headroom = 2 * 1024 * 1024
    stream_budget = max(usable - fixed_bytes - headroom, 2 * m * itemsize * _LANE)
    kpad = _round_up(kdim, _LANE)

    def fit(eff_item):
        tk = (stream_budget // (2 * m * eff_item)) // _LANE * _LANE
        return max(_LANE, min(tk, kpad))

    def limit(tk, eff_item):
        return int(max(usable, fixed_bytes + 2 * m * tk * eff_item + headroom))

    if k_tile is not None:  # explicit override (testing / tuning)
        tk = min(max(_LANE, (int(k_tile) // _LANE) * _LANE), kpad)
        needs_mask = (kdim % tk) != 0
        return tk, needs_mask, limit(tk, itemsize + (8 if needs_mask else 0))

    max_tk = fit(itemsize)
    if kdim % _LANE == 0:
        # Prefer an exactly-dividing tile (no mask); accept >= half of max_tk.
        cand = max_tk
        while cand >= max(_LANE, max_tk // 2):
            if kdim % cand == 0:
                return cand, False, limit(cand, itemsize)
            cand -= _LANE
    # Masked path: also budget for the iota/compare/select intermediates.
    tk = fit(itemsize + 8)
    needs_mask = (kdim % tk) != 0
    return tk, needs_mask, limit(tk, itemsize + (8 if needs_mask else 0))


def _prepare_features(x):
    """NCHW -> (B*C, H*W) view; keep bf16/f32 native for the MXU."""
    b, c, h, w = x.shape
    m = b * c
    kdim = h * w
    f = x.reshape(m, kdim)
    if f.dtype not in (jnp.bfloat16, jnp.float32):
        f = f.astype(jnp.float32)
    return f, m, kdim


def _masked_tile(f_ref, k, tk, kdim, needs_mask):
    """Load the current (m, tk) tile; zero lanes past kdim on the ragged tail."""
    f = f_ref[...]
    if needs_mask:
        col = lax.broadcasted_iota(jnp.int32, f.shape, 1) + k * tk
        f = jnp.where(col < kdim, f, jnp.zeros_like(f))
    return f


def _const_block_spec(shape, index_map):
    """Constant-index block, single-buffered (only read at the finalize step)."""
    try:
        return pl.BlockSpec(shape, index_map, pipeline_mode=pl.Buffered(1))
    except (TypeError, AttributeError):
        return pl.BlockSpec(shape, index_map)


# ----------------------------- gram matrix ----------------------------------
# G = (F @ F.T) / (B*C*H*W); grid iterates over K tiles, accumulating directly
# into the VMEM-resident output block (constant output index along K).
def _gram_kernel(f_ref, o_ref, *, scale, tk, kdim, needs_mask):
    k = pl.program_id(0)

    @pl.when(k == 0)
    def _():
        o_ref[...] = jnp.zeros_like(o_ref)

    f = _masked_tile(f_ref, k, tk, kdim, needs_mask)
    # Contract the lane axis of both operands: no transpose materialized.
    # TODO(synk): confirm via pl.lower_as_mlir that no per-step vxpose appears.
    o_ref[...] += lax.dot_general(
        f, f,
        dimension_numbers=(((1,), (1,)), ((), ())),
        preferred_element_type=jnp.float32,
    )

    @pl.when(k == pl.num_programs(0) - 1)
    def _():
        o_ref[...] *= scale


def gram_matrix(x, k_tile=None):
    b, c, h, w = x.shape
    f, m, kdim = _prepare_features(x)
    itemsize = jnp.dtype(f.dtype).itemsize
    # Resident buffers: (m, m) f32 output block (counted double-buffered).
    tk, needs_mask, vmem_limit = _plan(m, kdim, itemsize,
                                       fixed_bytes=2 * m * m * 4, k_tile=k_tile)
    scale = 1.0 / float(b * c * h * w)
    kernel = functools.partial(_gram_kernel, scale=scale, tk=tk, kdim=kdim,
                               needs_mask=needs_mask)
    # TODO(synk): for m = B*C >= ~256 (compute-bound) add a leading "parallel"
    # output-row-block grid axis (v7x dual-TensorCore split) and exploit
    # G = G^T to halve MXU flops; a bandwidth loss in the mem-bound small-m
    # regime exercised here, so not done.
    return pl.pallas_call(
        kernel,
        out_shape=jax.ShapeDtypeStruct((m, m), jnp.float32),
        grid_spec=pltpu.PrefetchScalarGridSpec(
            num_scalar_prefetch=0,
            grid=(pl.cdiv(kdim, tk),),
            in_specs=[pl.BlockSpec((m, tk), lambda k: (0, k))],
            out_specs=pl.BlockSpec((m, m), lambda k: (0, 0)),
        ),
        compiler_params=pltpu.CompilerParams(
            dimension_semantics=("arbitrary",),
            vmem_limit_bytes=vmem_limit,
        ),
    )(f)


# ------------------------ fused gram + MSE loss ------------------------------
# mean((G(x) - target)^2) in one kernel: gram accumulated in a VMEM scratch;
# MSE against the (resident, single-buffered) target in the finalize step,
# written as a scalar to SMEM.
def _gram_mse_kernel(f_ref, t_ref, o_ref, acc_ref, *, scale, inv_mm, tk, kdim,
                     needs_mask):
    k = pl.program_id(0)

    @pl.when(k == 0)
    def _():
        acc_ref[...] = jnp.zeros_like(acc_ref)

    f = _masked_tile(f_ref, k, tk, kdim, needs_mask)
    acc_ref[...] += lax.dot_general(
        f, f,
        dimension_numbers=(((1,), (1,)), ((), ())),
        preferred_element_type=jnp.float32,
    )

    @pl.when(k == pl.num_programs(0) - 1)
    def _():
        d = acc_ref[...] * scale - t_ref[...]
        o_ref[0] = jnp.sum(d * d) * inv_mm


def style_mse_loss(x, target_gram, k_tile=None):
    b, c, h, w = x.shape
    f, m, kdim = _prepare_features(x)
    itemsize = jnp.dtype(f.dtype).itemsize
    # Resident buffers: (m, m) f32 accumulator scratch + target block.
    tk, needs_mask, vmem_limit = _plan(m, kdim, itemsize,
                                       fixed_bytes=3 * m * m * 4, k_tile=k_tile)
    scale = 1.0 / float(b * c * h * w)
    kernel = functools.partial(_gram_mse_kernel, scale=scale,
                               inv_mm=1.0 / float(m * m), tk=tk, kdim=kdim,
                               needs_mask=needs_mask)
    out = pl.pallas_call(
        kernel,
        out_shape=jax.ShapeDtypeStruct((1,), jnp.float32),
        grid_spec=pltpu.PrefetchScalarGridSpec(
            num_scalar_prefetch=0,
            grid=(pl.cdiv(kdim, tk),),
            in_specs=[
                pl.BlockSpec((m, tk), lambda k: (0, k)),
                _const_block_spec((m, m), lambda k: (0, 0)),
            ],
            out_specs=pl.BlockSpec(memory_space=pltpu.MemorySpace.SMEM),
            scratch_shapes=[pltpu.VMEM((m, m), jnp.float32)],
        ),
        compiler_params=pltpu.CompilerParams(
            dimension_semantics=("arbitrary",),
            vmem_limit_bytes=vmem_limit,
        ),
    )(f, target_gram.astype(jnp.float32))
    return out[0]


# ------------------------------- StyleLoss -----------------------------------
class StyleLoss:
    """Mirrors torch StyleLoss: stores the target gram at init; forward
    computes the MSE between the input's gram matrix and the target, stashes
    it in self.loss, and returns the input unchanged."""

    def __init__(self, target_feature):
        self.target = gram_matrix(target_feature)
        self.loss = None

    def __call__(self, x):
        self.loss = style_mse_loss(x, self.target)
        return x


# ------------------------------- reference -----------------------------------
def _gram_ref(x):
    b, c, h, w = x.shape
    f = x.reshape(b * c, h * w).astype(jnp.float32)
    return (f @ f.T) / (b * c * h * w)


if __name__ == "__main__":
    key = jax.random.PRNGKey(0)
    k1, k2, k3, k4 = jax.random.split(key, 4)

    # batch=2, channels=4, spatial=16 (NCHW)
    target_feature = jax.random.normal(k1, (2, 4, 16, 16), dtype=jnp.float32)
    x = jax.random.normal(k2, (2, 4, 16, 16), dtype=jnp.float32)

    module = StyleLoss(target_feature)
    out = jax.block_until_ready(module(x))
    loss = jax.block_until_ready(module.loss)

    g_ref = _gram_ref(x)
    t_ref = _gram_ref(target_feature)
    loss_ref = jnp.mean((g_ref - t_ref) ** 2)
    assert jnp.allclose(out, x), "forward must return input unchanged"
    assert jnp.allclose(module.target, t_ref, rtol=1e-5, atol=1e-6)
    assert jnp.allclose(loss, loss_ref, rtol=1e-5, atol=1e-6), (loss, loss_ref)

    # ragged H*W (non-lane-multiple) path: in-kernel tail masking, no host pad
    tf2 = jax.random.normal(k3, (2, 4, 10, 10), dtype=jnp.float32)
    x2 = jax.random.normal(k4, (2, 4, 10, 10), dtype=jnp.float32)
    mod2 = StyleLoss(tf2)
    out2 = jax.block_until_ready(mod2(x2))
    loss2 = jax.block_until_ready(mod2.loss)
    loss2_ref = jnp.mean((_gram_ref(x2) - _gram_ref(tf2)) ** 2)
    assert jnp.allclose(out2, x2)
    assert jnp.allclose(loss2, loss2_ref, rtol=1e-5, atol=1e-6), (loss2, loss2_ref)

    # multi-step K accumulation path (forced small K tile -> grid of 2)
    g3 = jax.block_until_ready(gram_matrix(x, k_tile=128))
    loss3 = jax.block_until_ready(style_mse_loss(x, module.target, k_tile=128))
    assert jnp.allclose(g3, g_ref, rtol=1e-5, atol=1e-6)
    assert jnp.allclose(loss3, loss_ref, rtol=1e-5, atol=1e-6), (loss3, loss_ref)

    print("KERNEL_OK")
</pallas_src>

<mosaic_0001>
module attributes {stable_mosaic.version = 11 : i64} {
  func.func @_gram_kernel(%arg0: i32, %arg1: memref<8x256xf32, #tpu.memory_space<vmem>>, %arg2: memref<8x8xf32, #tpu.memory_space<vmem>>) attributes {dimension_semantics = [#tpu.dimension_semantics<arbitrary>], iteration_bounds = array<i64: 1>, scalar_prefetch = 0 : i64, scratch_operands = 0 : i64, tpu.core_type = #tpu.core_type<tc>, window_params = [{transform_indices = @transform_0, window_bounds = array<i64: 8, 256>}, {pipeline_mode = #tpu.pipeline_mode<synchronous>, transform_indices = @transform_1, window_bounds = array<i64: 8, 8>}]} {
    %c0_i32 = arith.constant 0 : i32
    %0 = arith.cmpi eq, %arg0, %c0_i32 : i32
    %1 = arith.extui %0 : i1 to i32
    %c0_i32_0 = arith.constant 0 : i32
    %2 = arith.cmpi ne, %1, %c0_i32_0 : i32
    scf.if %2 {
      %cst_8 = arith.constant 0.000000e+00 : f32
      %11 = vector.broadcast %cst_8 : f32 to vector<8x8xf32>
      %c0_9 = arith.constant 0 : index
      %c0_10 = arith.constant 0 : index
      %12 = vector.load %arg2[%c0_9, %c0_10] : memref<8x8xf32, #tpu.memory_space<vmem>>, vector<8x8xf32>
      tpu.vector_store %arg2[%c0_9, %c0_10], %11 {strides = array<i32>} : memref<8x8xf32, #tpu.memory_space<vmem>>, vector<8x8xf32>,
    } else {
    }
    %c0 = arith.constant 0 : index
    %c0_1 = arith.constant 0 : index
    %3 = vector.load %arg1[%c0, %c0_1] : memref<8x256xf32, #tpu.memory_space<vmem>>, vector<8x256xf32>
    %c0_2 = arith.constant 0 : index
    %c0_3 = arith.constant 0 : index
    %4 = vector.load %arg2[%c0_2, %c0_3] : memref<8x8xf32, #tpu.memory_space<vmem>>, vector<8x8xf32>
    %cst = arith.constant dense<0.000000e+00> : vector<8x8xf32>
    %5 = tpu.matmul %3, %3, %cst {dimension_numbers = #tpu.dot_dimension_numbers<[1], [1], [0], [0], [0, 0, 1, 0], [], []>} : vector<8x256xf32>, vector<8x256xf32>, vector<8x8xf32> -> vector<8x8xf32>
    %6 = arith.addf %4, %5 : vector<8x8xf32>
    %c0_4 = arith.constant 0 : index
    %c0_5 = arith.constant 0 : index
    %7 = vector.load %arg2[%c0_4, %c0_5] : memref<8x8xf32, #tpu.memory_space<vmem>>, vector<8x8xf32>
    tpu.vector_store %arg2[%c0_4, %c0_5], %6 {strides = array<i32>} : memref<8x8xf32, #tpu.memory_space<vmem>>, vector<8x8xf32>,
    %c0_i32_6 = arith.constant 0 : i32
    %8 = arith.cmpi eq, %arg0, %c0_i32_6 : i32
    %9 = arith.extui %8 : i1 to i32
    %c0_i32_7 = arith.constant 0 : i32
    %10 = arith.cmpi ne, %9, %c0_i32_7 : i32
    scf.if %10 {
      %c0_8 = arith.constant 0 : index
      %c0_9 = arith.constant 0 : index
      %11 = vector.load %arg2[%c0_8, %c0_9] : memref<8x8xf32, #tpu.memory_space<vmem>>, vector<8x8xf32>
      %cst_10 = arith.constant 4.8828125E-4 : f32
      %12 = vector.broadcast %cst_10 : f32 to vector<8x8xf32>
      %13 = arith.mulf %11, %12 : vector<8x8xf32>
      %c0_11 = arith.constant 0 : index
      %c0_12 = arith.constant 0 : index
      %14 = vector.load %arg2[%c0_11, %c0_12] : memref<8x8xf32, #tpu.memory_space<vmem>>, vector<8x8xf32>
      tpu.vector_store %arg2[%c0_11, %c0_12], %13 {strides = array<i32>} : memref<8x8xf32, #tpu.memory_space<vmem>>, vector<8x8xf32>,
    } else {
    }
    return
  }
  func.func @transform_0(%arg0: i32) -> (i32, i32) {
    %c0_i32 = arith.constant 0 : i32
    %c0_i32_0 = arith.constant 0 : i32
    return %c0_i32, %arg0 : i32, i32
  }
  func.func @transform_1(%arg0: i32) -> (i32, i32) {
    %c0_i32 = arith.constant 0 : i32
    %c0_i32_0 = arith.constant 0 : i32
    %c0_i32_1 = arith.constant 0 : i32
    return %c0_i32, %c0_i32_0 : i32, i32
  }
}

</mosaic_0001>

<bundles_post_ra>
// kernel: tpu_custom_call.1
= control target key start
LH: loop header
LB: loop body
LE: loop exit
PB: predicated region body
PF: predicated region fallthrough
CT: control target
= control target key end

     0   :  { %6 = vsyncpa [#allocation3], 0  ;;  %s175_s0 = inlined_call_operand.hbm [shape: f32[8,256], index: 0, kind: input, shape index: {}]   ;;  %s176_s1 = inlined_call_operand.hbm [shape: f32[8,8], index: 1, kind: output, shape index: {}]  }
   0x1   :  { %7 = vsyncpa [#allocation4], 0  ;;  %s13_s8 = sshll.u32 %s175_s0, 4  ;;  %s153_s9 = smov [#allocation2]   ;;  %s14_s8 = int_to_ptr.hbm [resolvable:$true] %s13_s8 }
   0x2   :  { %s15_s10 = sshll.u32 %s153_s9, 4  ;;  %s16_s10 = int_to_ptr.vmem [resolvable:$true] %s15_s10 }
   0x3   :  { %18 = dma.hbm_to_vmem [thread:$0]  %s14_s8, 256, %s16_s10, [#allocation3]  }
   0x4   :  { %149 = dma.done.wait [#allocation3], 256  }
   0x5   :  { %150 = vsyncadd [#allocation3], 4294967040  ;;  %v29_v0 = vld [vmem:[#allocation2] sm:$0xff]  ;;  %v30_v1 = vld [vmem:[#allocation2 + $0x8] sm:$0xff]  ;;  %vm27_vm0 = vcmask 64512   ;;  %v154_v2 = vmov 0.0  }
   0x6   :  { %47 = vmatpush.xpose.msra.mxu0 %v29_v0  ;;  %67 = vmatpush.xpose.msra.mxu1 %v30_v1  ;;  %28 = vst.msk [vmem:[#allocation5] sm:$0xff] %vm27_vm0, %v154_v2  ;;  %s155_s0 = smov [#allocation5]   ;;  %s88_s14 = sshll.u32 %s176_s1, 4  ;;  %s89_s14 = int_to_ptr.hbm [resolvable:$true] %s88_s14 }
   0x7   :  { %s86_s11 = sshll.u32 %s155_s0, 4  ;;  %s87_s11 = int_to_ptr.vmem [resolvable:$true] %s86_s11 }
   0x9   :  { %48 = vmatmul.f32.vlgmr.msra.gmra.mxu0 %v29_v0  ;;  %68 = vmatmul.f32.vlgmr.msra.gmra.mxu1 %v30_v1 }
   0xd   :  { %v31_v4 = vld [vmem:[#allocation5] sm:$0xff] }
  0x86   :  { %v49_v3 = vpop.f32.mrf.mxu0  ;;  %v69_v5 = vpop.f32.mrf.mxu1 }
  0x87   :  { %v70_v6 = vadd.f32 %v69_v5, %v49_v3 }
  0x89   :  { %v72_v7 = vadd.f32 %v70_v6, %v31_v4 }
  0x8b   :  { %74 = vst.msk [vmem:[#allocation5] sm:$0xff] %vm27_vm0, %v72_v7 }
  0x92   :  { %v78_v8 = vld [vmem:[#allocation5] sm:$0xff] }
  0x93   :  { %v79_v9 = vmul.f32 0.00048828125, %v78_v8 }
  0x95   :  { %80 = vst.msk [vmem:[#allocation5] sm:$0xff] %vm27_vm0, %v79_v9 }
  0x96   :  { %91 = dma.vmem_to_hbm [thread:$0]  %s87_s11, 128, %s89_s14, [#allocation4]  }
  0x97   :  { %151 = dma.done.wait [#allocation4], 128  }
  0x98   :  { %152 = vsyncadd [#allocation4], 4294967168 }
  0x99   :  { %96 = vsyncpa [#allocation3], 1 }
  0x9a   :  { %97 = vsyncpa [#allocation4], 1 }

</bundles_post_ra>
